<compile_context>
chip_gen: v5e
topology: v5e:2x2
jax: 0.10.0
libtpu: 0.0.40
codegen_flags: <defaults>
</compile_context>

<pallas_src>
import jax
import jax.numpy as jnp
import numpy as np
from jax.experimental import pallas as pl
from jax.experimental.pallas import tpu as pltpu

CLAMP_MIN = -5.0
CLAMP_MAX = 3.0


# ----------------------------- mask construction (glue, plain numpy) -----------------

def create_mask_i(num_i, num_o, D):
    assert num_i == D
    i = np.arange(num_i)
    o = np.arange(num_o) % (D - 1)
    return (o[:, None] >= i[None, :]).astype(np.float32)      # (num_o, num_i)


def create_mask_h(num_i, num_o, D):
    i = np.arange(num_i) % (D - 1)
    o = np.arange(num_o) % (D - 1)
    return (o[:, None] >= i[None, :]).astype(np.float32)


def create_mask_o(num_i, num_o, D):
    i = np.arange(num_i) % (D - 1)
    o = np.arange(num_o) % D
    return (o[:, None] > i[None, :]).astype(np.float32)


def create_masks(D, hs, m):
    assert D > 1, "masks use modulo (D-1); D must be > 1"
    masks = [create_mask_i(D, hs[0], D)]
    for i in range(1, len(hs)):
        masks.append(create_mask_h(hs[i - 1], hs[i], D))
    masks.append(create_mask_o(hs[-1], m * D, D))
    return masks


# ----------------------------- Pallas kernel -----------------------------------------

def _iaf_fwd_kernel(u_ref, w0_ref, b0_ref, w1_ref, b1_ref, w2_ref, b2_ref, x_ref):
    # u_ref: (TILE_N, D) in natural layout.  Transpose in-kernel (XLU, essentially
    # free) so batch rides the lane axis for the matmuls and elementwise math.
    ut = jnp.transpose(u_ref[...])                                     # (D, TILE_N)
    D = ut.shape[0]

    h = jnp.dot(w0_ref[...], ut, preferred_element_type=jnp.float32) + b0_ref[...]
    h = jnp.maximum(h, 0.0)                                            # ReLU, (h0, TILE_N)
    h = jnp.dot(w1_ref[...], h, preferred_element_type=jnp.float32) + b1_ref[...]
    h = jnp.maximum(h, 0.0)                                            # ReLU, (h1, TILE_N)

    # Fused mu/alpha head: one (2D, h1) matmul.  Row offset D (=8) is exactly one
    # f32 sublane tile, so the split below is a free sublane slice (no relayout).
    y = jnp.dot(w2_ref[...], h, preferred_element_type=jnp.float32) + b2_ref[...]
    mu = y[:D, :]
    alpha = jnp.clip(y[D:, :], CLAMP_MIN, CLAMP_MAX)

    # x = (u - mu) * exp(-alpha)   (MAF.inverse == IAF.forward)
    xt = (ut - mu) * jnp.exp(-alpha)                                   # (D, TILE_N)
    x_ref[...] = jnp.transpose(xt)                                     # store (TILE_N, D)


def iaf_forward(u, params, *, tile_n=None):
    """u: (N, D) float32.  params: [(w, b), ...] with w (out, in) pre-masked, b (out, 1)."""
    (w0, b0), (w1, b1), (w2, b2) = params
    N, D = u.shape
    h0 = w0.shape[0]
    h1 = w1.shape[0]

    if tile_n is None:
        # Multiple of 256 (MXU-friendly on all generations), ~2 grid steps so v7x can
        # shard across both TensorCores, capped at 1024 (vreg pressure of (32, tile_n)).
        tile_n = int(min(1024, max(256, 256 * pl.cdiv(pl.cdiv(N, 2), 256))))

    n_pad = tile_n * pl.cdiv(N, tile_n)
    # Pad only in the ragged case (sublane-axis zero pad); N=512 / tile_n=256 skips it.
    u_in = u if n_pad == N else jnp.pad(u, ((0, n_pad - N), (0, 0)))

    grid = (n_pad // tile_n,)

    stream_spec = pl.BlockSpec((tile_n, D), lambda i: (i, 0))          # u / x, streamed
    resident = lambda shape: pl.BlockSpec(shape, lambda i: (0, 0))     # weights stay put

    flops = 2 * N * (D * h0 + h0 * h1 + 2 * D * h1)
    bytes_accessed = 4 * (2 * N * D + w0.size + b0.size + w1.size + b1.size
                          + w2.size + b2.size)

    x = pl.pallas_call(
        _iaf_fwd_kernel,
        out_shape=jax.ShapeDtypeStruct((n_pad, D), jnp.float32),
        grid_spec=pl.GridSpec(
            grid=grid,
            in_specs=[
                stream_spec,
                resident(w0.shape), resident(b0.shape),
                resident(w1.shape), resident(b1.shape),
                resident(w2.shape), resident(b2.shape),
            ],
            out_specs=stream_spec,
        ),
        compiler_params=pltpu.CompilerParams(
            dimension_semantics=("parallel",),   # batch tiles independent -> shard across TCs
        ),
        cost_estimate=pl.CostEstimate(
            flops=flops, transcendentals=N * D, bytes_accessed=bytes_accessed),
    )(u_in, w0, b0, w1, b1, w2, b2)

    return x if n_pad == N else x[:N]


# ----------------------------- parameter setup (deterministic) -----------------------

def init_linear(key, fan_in, fan_out):
    """Mimic nn.Linear default init: U(-1/sqrt(fan_in), 1/sqrt(fan_in))."""
    kw, kb = jax.random.split(key)
    bound = 1.0 / np.sqrt(fan_in)
    w = jax.random.uniform(kw, (fan_out, fan_in), jnp.float32, -bound, bound)
    b = jax.random.uniform(kb, (fan_out,), jnp.float32, -bound, bound)
    return w, b


def build_iaf_params(key, D, hs):
    m = 2  # MAF uses AutoRegressiveNN(D, hs, 2)
    masks = create_masks(D, hs, m)
    dims = [D] + list(hs) + [m * D]
    keys = jax.random.split(key, len(dims) - 1)

    layers = []
    for li in range(len(dims) - 1):
        w, b = init_linear(keys[li], dims[li], dims[li + 1])
        w_masked = w * jnp.asarray(masks[li])                  # (out, in), mask pre-folded
        layers.append((w_masked, b[:, None]))                  # bias as (out, 1)

    # Keep the output head fused (2D, h1); chunk(2, dim=-1) == rows [:D] -> mu, [D:] -> alpha.
    return layers


# ----------------------------- reference (plain JAX, for sanity) ---------------------

def iaf_forward_ref(u, params):
    (w0, b0), (w1, b1), (w2, b2) = params
    D = u.shape[-1]
    h = jnp.maximum(u @ w0.T + b0[:, 0], 0.0)
    h = jnp.maximum(h @ w1.T + b1[:, 0], 0.0)
    y = h @ w2.T + b2[:, 0]
    mu = y[:, :D]
    alpha = jnp.clip(y[:, D:], CLAMP_MIN, CLAMP_MAX)
    return (u - mu) * jnp.exp(-alpha)


# ----------------------------- main ---------------------------------------------------

if __name__ == "__main__":
    D = 8
    hs = [32, 32]
    N = 512  # batch (2 grid tiles of 256 -> both v7x TensorCores get work)

    key = jax.random.PRNGKey(0)
    k_param, k_u = jax.random.split(key)

    params = build_iaf_params(k_param, D, hs)
    u = jax.random.uniform(k_u, (N, D), jnp.float32)

    x = iaf_forward(u, params)
    x = jax.block_until_ready(x)

    x_ref = iaf_forward_ref(u, params)
    assert x.shape == (N, D) and x.dtype == jnp.float32
    assert jnp.allclose(x, x_ref, atol=1e-5, rtol=1e-5), "mismatch vs reference"

    # TODO(synk): MAF.forward / IAF.inverse (the sequential D-step sampling loop) and the
    # logdetJ cache side-effect are not part of IAF.forward and are not implemented here.

    print("KERNEL_OK")
</pallas_src>

<mosaic_0001>
module attributes {stable_mosaic.version = 11 : i64} {
  func.func @_iaf_fwd_kernel(%arg0: i32, %arg1: memref<256x8xf32, #tpu.memory_space<vmem>>, %arg2: memref<32x8xf32, #tpu.memory_space<vmem>>, %arg3: memref<32x1xf32, #tpu.memory_space<vmem>>, %arg4: memref<32x32xf32, #tpu.memory_space<vmem>>, %arg5: memref<32x1xf32, #tpu.memory_space<vmem>>, %arg6: memref<16x32xf32, #tpu.memory_space<vmem>>, %arg7: memref<16x1xf32, #tpu.memory_space<vmem>>, %arg8: memref<256x8xf32, #tpu.memory_space<vmem>>) attributes {dimension_semantics = [#tpu.dimension_semantics<parallel>], iteration_bounds = array<i64: 2>, scalar_prefetch = 0 : i64, scratch_operands = 0 : i64, tpu.core_type = #tpu.core_type<tc>, window_params = [{transform_indices = @transform_0, window_bounds = array<i64: 256, 8>}, {pipeline_mode = #tpu.pipeline_mode<synchronous>, transform_indices = @transform_1, window_bounds = array<i64: 32, 8>}, {pipeline_mode = #tpu.pipeline_mode<synchronous>, transform_indices = @transform_2, window_bounds = array<i64: 32, 1>}, {pipeline_mode = #tpu.pipeline_mode<synchronous>, transform_indices = @transform_3, window_bounds = array<i64: 32, 32>}, {pipeline_mode = #tpu.pipeline_mode<synchronous>, transform_indices = @transform_4, window_bounds = array<i64: 32, 1>}, {pipeline_mode = #tpu.pipeline_mode<synchronous>, transform_indices = @transform_5, window_bounds = array<i64: 16, 32>}, {pipeline_mode = #tpu.pipeline_mode<synchronous>, transform_indices = @transform_6, window_bounds = array<i64: 16, 1>}, {transform_indices = @transform_7, window_bounds = array<i64: 256, 8>}]} {
    %c0 = arith.constant 0 : index
    %c0_0 = arith.constant 0 : index
    %0 = vector.load %arg1[%c0, %c0_0] : memref<256x8xf32, #tpu.memory_space<vmem>>, vector<256x8xf32>
    %1 = tpu.transpose %0, [1, 0] : vector<256x8xf32> -> vector<8x256xf32>
    %c0_1 = arith.constant 0 : index
    %c0_2 = arith.constant 0 : index
    %2 = vector.load %arg2[%c0_1, %c0_2] : memref<32x8xf32, #tpu.memory_space<vmem>>, vector<32x8xf32>
    %cst = arith.constant dense<0.000000e+00> : vector<32x256xf32>
    %3 = tpu.matmul %2, %1, %cst {dimension_numbers = #tpu.dot_dimension_numbers<[1], [0], [0], [1], [0, 0, 1, 1], [], []>} : vector<32x8xf32>, vector<8x256xf32>, vector<32x256xf32> -> vector<32x256xf32>
    %c0_3 = arith.constant 0 : index
    %c0_4 = arith.constant 0 : index
    %4 = vector.load %arg3[%c0_3, %c0_4] : memref<32x1xf32, #tpu.memory_space<vmem>>, vector<32x1xf32>
    %5 = vector.broadcast %4 : vector<32x1xf32> to vector<32x256xf32>
    %6 = arith.addf %3, %5 : vector<32x256xf32>
    %cst_5 = arith.constant 0.000000e+00 : f32
    %7 = vector.broadcast %cst_5 : f32 to vector<32x256xf32>
    %8 = arith.maximumf %6, %7 : vector<32x256xf32>
    %c0_6 = arith.constant 0 : index
    %c0_7 = arith.constant 0 : index
    %9 = vector.load %arg4[%c0_6, %c0_7] : memref<32x32xf32, #tpu.memory_space<vmem>>, vector<32x32xf32>
    %cst_8 = arith.constant dense<0.000000e+00> : vector<32x256xf32>
    %10 = tpu.matmul %9, %8, %cst_8 {dimension_numbers = #tpu.dot_dimension_numbers<[1], [0], [0], [1], [0, 0, 1, 1], [], []>} : vector<32x32xf32>, vector<32x256xf32>, vector<32x256xf32> -> vector<32x256xf32>
    %c0_9 = arith.constant 0 : index
    %c0_10 = arith.constant 0 : index
    %11 = vector.load %arg5[%c0_9, %c0_10] : memref<32x1xf32, #tpu.memory_space<vmem>>, vector<32x1xf32>
    %12 = vector.broadcast %11 : vector<32x1xf32> to vector<32x256xf32>
    %13 = arith.addf %10, %12 : vector<32x256xf32>
    %cst_11 = arith.constant 0.000000e+00 : f32
    %14 = vector.broadcast %cst_11 : f32 to vector<32x256xf32>
    %15 = arith.maximumf %13, %14 : vector<32x256xf32>
    %c0_12 = arith.constant 0 : index
    %c0_13 = arith.constant 0 : index
    %16 = vector.load %arg6[%c0_12, %c0_13] : memref<16x32xf32, #tpu.memory_space<vmem>>, vector<16x32xf32>
    %cst_14 = arith.constant dense<0.000000e+00> : vector<16x256xf32>
    %17 = tpu.matmul %16, %15, %cst_14 {dimension_numbers = #tpu.dot_dimension_numbers<[1], [0], [0], [1], [0, 0, 1, 1], [], []>} : vector<16x32xf32>, vector<32x256xf32>, vector<16x256xf32> -> vector<16x256xf32>
    %c0_15 = arith.constant 0 : index
    %c0_16 = arith.constant 0 : index
    %18 = vector.load %arg7[%c0_15, %c0_16] : memref<16x1xf32, #tpu.memory_space<vmem>>, vector<16x1xf32>
    %19 = vector.broadcast %18 : vector<16x1xf32> to vector<16x256xf32>
    %20 = arith.addf %17, %19 : vector<16x256xf32>
    %21 = vector.extract_strided_slice %20 {offsets = [0, 0], sizes = [8, 256], strides = [1, 1]} : vector<16x256xf32> to vector<8x256xf32>
    %22 = vector.extract_strided_slice %20 {offsets = [8, 0], sizes = [8, 256], strides = [1, 1]} : vector<16x256xf32> to vector<8x256xf32>
    %cst_17 = arith.constant -5.000000e+00 : f32
    %cst_18 = arith.constant 3.000000e+00 : f32
    %23 = vector.broadcast %cst_17 : f32 to vector<8x256xf32>
    %24 = arith.maximumf %23, %22 : vector<8x256xf32>
    %25 = vector.broadcast %cst_18 : f32 to vector<8x256xf32>
    %26 = arith.minimumf %25, %24 : vector<8x256xf32>
    %27 = arith.subf %1, %21 : vector<8x256xf32>
    %cst_19 = arith.constant 0.000000e+00 : f32
    %28 = vector.broadcast %cst_19 : f32 to vector<8x256xf32>
    %29 = arith.subf %28, %26 : vector<8x256xf32>
    %30 = math.exp %29 : vector<8x256xf32>
    %31 = arith.mulf %27, %30 : vector<8x256xf32>
    %32 = tpu.transpose %31, [1, 0] : vector<8x256xf32> -> vector<256x8xf32>
    %c0_20 = arith.constant 0 : index
    %c0_21 = arith.constant 0 : index
    %33 = vector.load %arg8[%c0_20, %c0_21] : memref<256x8xf32, #tpu.memory_space<vmem>>, vector<256x8xf32>
    tpu.vector_store %arg8[%c0_20, %c0_21], %32 {strides = array<i32>} : memref<256x8xf32, #tpu.memory_space<vmem>>, vector<256x8xf32>,
    return
  }
  func.func @transform_0(%arg0: i32) -> (i32, i32) {
    %c0_i32 = arith.constant 0 : i32
    %c0_i32_0 = arith.constant 0 : i32
    return %arg0, %c0_i32 : i32, i32
  }
  func.func @transform_1(%arg0: i32) -> (i32, i32) {
    %c0_i32 = arith.constant 0 : i32
    %c0_i32_0 = arith.constant 0 : i32
    %c0_i32_1 = arith.constant 0 : i32
    return %c0_i32, %c0_i32_0 : i32, i32
  }
  func.func @transform_2(%arg0: i32) -> (i32, i32) {
    %c0_i32 = arith.constant 0 : i32
    %c0_i32_0 = arith.constant 0 : i32
    %c0_i32_1 = arith.constant 0 : i32
    return %c0_i32, %c0_i32_0 : i32, i32
  }
  func.func @transform_3(%arg0: i32) -> (i32, i32) {
    %c0_i32 = arith.constant 0 : i32
    %c0_i32_0 = arith.constant 0 : i32
    %c0_i32_1 = arith.constant 0 : i32
    return %c0_i32, %c0_i32_0 : i32, i32
  }
  func.func @transform_4(%arg0: i32) -> (i32, i32) {
    %c0_i32 = arith.constant 0 : i32
    %c0_i32_0 = arith.constant 0 : i32
    %c0_i32_1 = arith.constant 0 : i32
    return %c0_i32, %c0_i32_0 : i32, i32
  }
  func.func @transform_5(%arg0: i32) -> (i32, i32) {
    %c0_i32 = arith.constant 0 : i32
    %c0_i32_0 = arith.constant 0 : i32
    %c0_i32_1 = arith.constant 0 : i32
    return %c0_i32, %c0_i32_0 : i32, i32
  }
  func.func @transform_6(%arg0: i32) -> (i32, i32) {
    %c0_i32 = arith.constant 0 : i32
    %c0_i32_0 = arith.constant 0 : i32
    %c0_i32_1 = arith.constant 0 : i32
    return %c0_i32, %c0_i32_0 : i32, i32
  }
  func.func @transform_7(%arg0: i32) -> (i32, i32) {
    %c0_i32 = arith.constant 0 : i32
    %c0_i32_0 = arith.constant 0 : i32
    return %arg0, %c0_i32 : i32, i32
  }
}

</mosaic_0001>

<bundles_post_ra>
// kernel: tpu_custom_call.1
= control target key start
LH: loop header
LB: loop body
LE: loop exit
PB: predicated region body
PF: predicated region fallthrough
CT: control target
= control target key end

     0   :  { %s928_s24 = smov 0   ;;  %s1140_s0 = inlined_call_operand.vmem [shape: f32[512,8], index: 0, kind: input, shape index: {}]   ;;  %s1141_s1 = inlined_call_operand.vmem [shape: f32[32,8], index: 1, kind: input, shape index: {}]   ;;  %s1142_s2 = inlined_call_operand.vmem [shape: f32[32,1], index: 2, kind: input, shape index: {}]   ;;  %s1143_s3 = inlined_call_operand.vmem [shape: f32[32,32], index: 3, kind: input, shape index: {}]   ;;  %s1144_s4 = inlined_call_operand.vmem [shape: f32[32,1], index: 4, kind: input, shape index: {}]   ;;  %s1145_s5 = inlined_call_operand.vmem [shape: f32[16,32], index: 5, kind: input, shape index: {}]   ;;  %s1146_s6 = inlined_call_operand.vmem [shape: f32[16,1], index: 6, kind: input, shape index: {}]   ;;  %s1147_s7 = inlined_call_operand.vmem [shape: f32[512,8], index: 7, kind: output, shape index: {}]  }
   0x1 LB: > { %s824_s25 = sadd.s32 4294967295, %s885_s24   ;;  %p828_p0 = scmp.ge.s32.totalorder %s885_s24, 1  ;;  %s885_s24 = sphi %s928_s24, %s17_s24  }
   0x2   : > { %p238_p1 = scmp.lt.s32.totalorder %s885_s24, 3 }
   0x4   : > { %p239_p2 = pnand %p828_p0, %p238_p1 }
   0x5   : > { %s829_s26 = sshll.u32 (!%p239_p2), %s824_s25, 5 }
   0x6   : > { %242 = sbr.rel (%p239_p2) target bundleno = 1064 (0x428), region = 48  ;;  %p271_p3 = scmp.lt.s32.totalorder (!%p239_p2), %s829_s26, 63 }
   0xb   : > { %s1149_s26 = smov (!%p271_p3, %s829_s26), 63  ;;  %v385_v24 = vld [vmem:[%s1142_s2 + $0x18] sm:$0xff]  ;;  %v887_v25 = vmov 0   ;;  %v384_v28 = vld [vmem:[%s1142_s2 + $0x10] sm:$0xff]  ;;  %v383_v31 = vld [vmem:[%s1142_s2 + $0x8] sm:$0xff]  ;;  %vm406_vm0 = vcmask 64512  }
   0xc   : > { %s830_s27 = sshll.u32 %s1149_s26, 3  ;;  %873 = vset.pattern.permute.xlu2 %v887_v25  ;;  %v382_v34 = vld [vmem:[%s1142_s2] sm:$0xff]  ;;  %v492_v37 = vld [vmem:[%s1144_s4 + $0x18] sm:$0xff]  ;;  %v491_v38 = vld [vmem:[%s1144_s4 + $0x10] sm:$0xff]  ;;  %vm513_vm1 = vcmask 261120  }
   0xd   : > { %s944_s30 = scalar_lea.vmem %s1140_s0, %s830_s27  ;;  %403 = vperm.xlu2 %873, %v385_v24   ;;  %v490_v39 = vld [vmem:[%s1144_s4 + $0x8] sm:$0xff]  ;;  %v489_v40 = vld [vmem:[%s1144_s4] sm:$0xff]  ;;  %v380_v47 = vld [vmem:[%s1141_s1 + $0x10] sm:$0xff]  ;;  %s1071_s10 = scalar_lea.vmem %s1147_s7, %s830_s27 }
   0xe   : > { %v298_v0 = vld [vmem:[%s944_s30 + $0x80] sm:$0xff]  ;;  %v299_v2 = vld [vmem:[%s944_s30 + $0x88] sm:$0xff]  ;;  %v300_v4 = vld [vmem:[%s944_s30 + $0x90] sm:$0xff] }
   0xf   : > { %v282_v1 = vld [vmem:[%s944_s30] sm:$0xff]  ;;  %346 = vxpose.xlu1.b32.start [1/16] (narrow) %v298_v0, 8  ;;  %v283_v3 = vld [vmem:[%s944_s30 + $0x8] sm:$0xff]  ;;  %v284_v5 = vld [vmem:[%s944_s30 + $0x10] sm:$0xff] }
  0x10   : > { %314 = vxpose.xlu0.b32.start [1/16] (narrow) %v282_v1, 8  ;;  %v301_v6 = vld [vmem:[%s944_s30 + $0x98] sm:$0xff]  ;;  %v302_v8 = vld [vmem:[%s944_s30 + $0xa0] sm:$0xff]  ;;  %v303_v10 = vld [vmem:[%s944_s30 + $0xa8] sm:$0xff] }
  0x11   : > { %v285_v7 = vld [vmem:[%s944_s30 + $0x18] sm:$0xff]  ;;  %v286_v9 = vld [vmem:[%s944_s30 + $0x20] sm:$0xff]  ;;  %v287_v11 = vld [vmem:[%s944_s30 + $0x28] sm:$0xff] }
  0x12   : > { %v304_v12 = vld [vmem:[%s944_s30 + $0xb0] sm:$0xff]  ;;  %v305_v14 = vld [vmem:[%s944_s30 + $0xb8] sm:$0xff]  ;;  %v306_v16 = vld [vmem:[%s944_s30 + $0xc0] sm:$0xff] }
  0x13   : > { %v288_v13 = vld [vmem:[%s944_s30 + $0x30] sm:$0xff]  ;;  %v289_v15 = vld [vmem:[%s944_s30 + $0x38] sm:$0xff]  ;;  %v290_v17 = vld [vmem:[%s944_s30 + $0x40] sm:$0xff] }
  0x14   : > { %v307_v18 = vld [vmem:[%s944_s30 + $0xc8] sm:$0xff]  ;;  %v308_v20 = vld [vmem:[%s944_s30 + $0xd0] sm:$0xff]  ;;  %v309_v22 = vld [vmem:[%s944_s30 + $0xd8] sm:$0xff] }
  0x15   : > { %v291_v19 = vld [vmem:[%s944_s30 + $0x48] sm:$0xff]  ;;  %v292_v21 = vld [vmem:[%s944_s30 + $0x50] sm:$0xff]  ;;  %v293_v23 = vld [vmem:[%s944_s30 + $0x58] sm:$0xff]  ;;  %398 = vperm.xlu2 %873, %v384_v28  }
  0x16   : > { %v310_v26 = vld [vmem:[%s944_s30 + $0xe0] sm:$0xff]  ;;  %v311_v29 = vld [vmem:[%s944_s30 + $0xe8] sm:$0xff]  ;;  %v312_v32 = vld [vmem:[%s944_s30 + $0xf0] sm:$0xff] }
  0x17   : > { %347 = vxpose.xlu1.b32.cont [2/16] (narrow) %v299_v2, 8  ;;  %v294_v27 = vld [vmem:[%s944_s30 + $0x60] sm:$0xff]  ;;  %v295_v30 = vld [vmem:[%s944_s30 + $0x68] sm:$0xff]  ;;  %v296_v33 = vld [vmem:[%s944_s30 + $0x70] sm:$0xff] }
  0x18   : > { %315 = vxpose.xlu0.b32.cont [2/16] (narrow) %v283_v3, 8  ;;  %v313_v35 = vld [vmem:[%s944_s30 + $0xf8] sm:$0xff]  ;;  %v378_v41 = vld [vmem:[%s1141_s1] sm:$0xff]  ;;  %v595_v44 = vld [vmem:[%s1146_s6 + $0x8] sm:$0xff] }
  0x19   : > { %v297_v36 = vld [vmem:[%s944_s30 + $0x78] sm:$0xff]  ;;  %v379_v45 = vld [vmem:[%s1141_s1 + $0x8] sm:$0xff]  ;;  %v594_v46 = vld [vmem:[%s1146_s6] sm:$0xff] }
  0x1a   : > { %v381_v48 = vld [vmem:[%s1141_s1 + $0x18] sm:$0xff] }
  0x1d   : > { %393 = vperm.xlu2 %873, %v383_v31  }
  0x1f   : > { %348 = vxpose.xlu1.b32.cont [3/16] (narrow) %v300_v4, 8 }
  0x20   : > { %316 = vxpose.xlu0.b32.cont [3/16] (narrow) %v284_v5, 8 }
  0x25   : > { %388 = vperm.xlu2 %873, %v382_v34  }
  0x27   : > { %349 = vxpose.xlu1.b32.cont [4/16] (narrow) %v301_v6, 8 }
  0x28   : > { %317 = vxpose.xlu0.b32.cont [4/16] (narrow) %v285_v7, 8 }
  0x2d   : > { %510 = vperm.xlu2 %873, %v492_v37  }
  0x2f   : > { %350 = vxpose.xlu1.b32.cont [5/16] (narrow) %v302_v8, 8 }
  0x30   : > { %318 = vxpose.xlu0.b32.cont [5/16] (narrow) %v286_v9, 8 }
  0x35   : > { %505 = vperm.xlu2 %873, %v491_v38  }
  0x37   : > { %351 = vxpose.xlu1.b32.cont [6/16] (narrow) %v303_v10, 8 }
  0x38   : > { %319 = vxpose.xlu0.b32.cont [6/16] (narrow) %v287_v11, 8 }
  0x3d   : > { %500 = vperm.xlu2 %873, %v490_v39  }
  0x3f   : > { %352 = vxpose.xlu1.b32.cont [7/16] (narrow) %v304_v12, 8 }
  0x40   : > { %320 = vxpose.xlu0.b32.cont [7/16] (narrow) %v288_v13, 8  ;;  %v485_v13 = vld [vmem:[%s1143_s3] sm:$0xff] }
  0x45   : > { %495 = vperm.xlu2 %873, %v489_v40  }
  0x47   : > { %353 = vxpose.xlu1.b32.cont [8/16] (narrow) %v305_v14, 8  ;;  %v486_v14 = vld [vmem:[%s1143_s3 + $0x8] sm:$0xff] }
  0x48   : > { %321 = vxpose.xlu0.b32.cont [8/16] (narrow) %v289_v15, 8  ;;  %v487_v15 = vld [vmem:[%s1143_s3 + $0x10] sm:$0xff] }
  0x4d   : > { %603 = vperm.xlu2 %873, %v595_v44  }
  0x4f   : > { %354 = vxpose.xlu1.b32.cont [9/16] (narrow) %v306_v16, 8  ;;  %v488_v16 = vld [vmem:[%s1143_s3 + $0x18] sm:$0xff] }
  0x50   : > { %322 = vxpose.xlu0.b32.cont [9/16] (narrow) %v290_v17, 8 }
  0x55   : > { %598 = vperm.xlu2 %873, %v594_v46  }
  0x57   : > { %355 = vxpose.xlu1.b32.cont [10/16] (narrow) %v307_v18, 8 }
  0x58   : > { %323 = vxpose.xlu0.b32.cont [10/16] (narrow) %v291_v19, 8 }
  0x5f   : > { %356 = vxpose.xlu1.b32.cont [11/16] (narrow) %v308_v20, 8 }
  0x60   : > { %324 = vxpose.xlu0.b32.cont [11/16] (narrow) %v292_v21, 8 }
  0x67   : > { %357 = vxpose.xlu1.b32.cont [12/16] (narrow) %v309_v22, 8  ;;  %v404_v49 = vpop.permute.xlu2 %403 }
  0x68   : > { %325 = vxpose.xlu0.b32.cont [12/16] (narrow) %v293_v23, 8 }
  0x6f   : > { %358 = vxpose.xlu1.b32.cont [13/16] (narrow) %v310_v26, 8  ;;  %v399_v52 = vpop.permute.xlu2 %398 }
  0x70   : > { %326 = vxpose.xlu0.b32.cont [13/16] (narrow) %v294_v27, 8 }
  0x77   : > { %359 = vxpose.xlu1.b32.cont [14/16] (narrow) %v311_v29, 8  ;;  %v394_v57 = vpop.permute.xlu2 %393 }
  0x78   : > { %327 = vxpose.xlu0.b32.cont [14/16] (narrow) %v295_v30, 8 }
  0x7f   : > { %360 = vxpose.xlu1.b32.cont [15/16] (narrow) %v312_v32, 8  ;;  %v389_v4 = vpop.permute.xlu2 %388 }
  0x80   : > { %328 = vxpose.xlu0.b32.cont [15/16] (narrow) %v296_v33, 8 }
  0x87   : > { %361 = vxpose.xlu1.b32.end [16/16] (narrow) %v313_v35, 8  ;;  %v511_v17 = vpop.permute.xlu2 %510 }
  0x88   : > { %329 = vxpose.xlu0.b32.end [16/16] (narrow) %v297_v36, 8 }
  0x8f   : > { %v506_v20 = vpop.permute.xlu2 %505 }
  0xb3   : > { %v1005_v42 = vpop.trf.xlu1 }
  0xb4   : > { %v1007_v43 = vpop.trf.xlu0  ;;  %463 = vmatpush.msra.mxu1 %v1005_v42 }
  0xb5   : > { %434 = vmatpush.msra.mxu0 %v1007_v43  ;;  %837 = vmatmul.msk.f32.vlgmr.msra.gmra.mxu1 %vm406_vm0, %v378_v41 }
  0xb6   : > { %833 = vmatmul.msk.f32.vlgmr.msra.gmra.mxu0 %vm406_vm0, %v378_v41 }
  0xbd   : > { %838 = vmatmul.msk.f32.gmra.mxu1 %vm406_vm0, %v379_v45 }
  0xbe   : > { %834 = vmatmul.msk.f32.gmra.mxu0 %vm406_vm0, %v379_v45 }
  0xc5   : > { %839 = vmatmul.msk.f32.gmra.mxu1 %vm406_vm0, %v380_v47 }
  0xc6   : > { %835 = vmatmul.msk.f32.gmra.mxu0 %vm406_vm0, %v380_v47  ;;  %v592_v47 = vld [vmem:[%s1145_s5] sm:$0xff] }
  0xcd   : > { %840 = vmatmul.msk.f32.gmra.mxu1 %vm406_vm0, %v381_v48 }
  0xce   : > { %836 = vmatmul.msk.f32.gmra.mxu0 %vm406_vm0, %v381_v48  ;;  %v593_v48 = vld [vmem:[%s1145_s5 + $0x8] sm:$0xff] }
  0xef   : > { %874 = vset.pattern.permute.xlu0 %v887_v25  ;;  %v501_v25 = vpop.permute.xlu2 %500 }
  0xf7   : > { %v496_v35 = vpop.permute.xlu2 %495 }
 0x132   : > { %v465_v51 = vpop.f32.mrf.mxu1 }
 0x133   : > { %v436_v50 = vpop.f32.mrf.mxu0  ;;  %v466_v6 = vadd.f32 %v465_v51, %v389_v4 }
 0x134   : > { %v437_v5 = vadd.f32 %v436_v50, %v389_v4 }
 0x135   : > { %v478_v12 = vmax.f32 %v466_v6, 0.0 }
 0x136   : > { %v477_v11 = vmax.f32 %v437_v5, 0.0 }
 0x13a   : > { %v468_v54 = vpop.f32.mrf.mxu1 }
 0x13b   : > { %v439_v53 = vpop.f32.mrf.mxu0  ;;  %v469_v1 = vadd.f32 %v468_v54, %v394_v57 }
 0x13c   : > { %v440_v0 = vadd.f32 %v439_v53, %v394_v57 }
 0x13d   : > { %v480_v10 = vmax.f32 %v469_v1, 0.0 }
 0x13e   : > { %v479_v9 = vmax.f32 %v440_v0, 0.0 }
 0x142   : > { %v471_v56 = vpop.f32.mrf.mxu1 }
 0x143   : > { %v442_v55 = vpop.f32.mrf.mxu0  ;;  %v472_v61 = vadd.f32 %v471_v56, %v399_v52 }
 0x144   : > { %v443_v60 = vadd.f32 %v442_v55, %v399_v52 }
 0x145   : > { %v482_v8 = vmax.f32 %v472_v61, 0.0 }
 0x146   : > { %v481_v7 = vmax.f32 %v443_v60, 0.0 }
 0x14a   : > { %v474_v59 = vpop.f32.mrf.mxu1 }
 0x14b   : > { %v445_v58 = vpop.f32.mrf.mxu0  ;;  %v475_v63 = vadd.f32 %v474_v59, %v404_v49 }
 0x14c   : > { %v446_v62 = vadd.f32 %v445_v58, %v404_v49  ;;  %v604_v49 = vpop.permute.xlu2 %603 }
 0x14d   : > { %v484_v3 = vmax.f32 %v475_v63, 0.0 }
 0x14e   : > { %v483_v2 = vmax.f32 %v446_v62, 0.0 }
 0x14f   : > { %567 = vmatpush.msra.mxu3 %v484_v3 }
 0x150   : > { %538 = vmatpush.msra.mxu2 %v483_v2 }
 0x151   : > { %568 = vmatpush.msra.mxu3 %v482_v8 }
 0x152   : > { %539 = vmatpush.msra.mxu2 %v481_v7 }
 0x153   : > { %569 = vmatpush.msra.mxu3 %v480_v10 }
 0x154   : > { %540 = vmatpush.msra.mxu2 %v479_v9  ;;  %v599_v57 = vpop.permute.xlu2 %598 }
 0x155   : > { %570 = vmatpush.msra.mxu3 %v478_v12 }
 0x156   : > { %541 = vmatpush.msra.mxu2 %v477_v11  ;;  %845 = vmatmul.msk.f32.vlgmr.msra.gmra.mxu3 %vm513_vm1, %v485_v13 }
 0x157   : > { %841 = vmatmul.msk.f32.vlgmr.msra.gmra.mxu2 %vm513_vm1, %v485_v13 }
 0x15e   : > { %846 = vmatmul.msk.f32.gmra.mxu3 %vm513_vm1, %v486_v14 }
 0x15f   : > { %842 = vmatmul.msk.f32.gmra.mxu2 %vm513_vm1, %v486_v14 }
 0x166   : > { %847 = vmatmul.msk.f32.gmra.mxu3 %vm513_vm1, %v487_v15 }
 0x167   : > { %843 = vmatmul.msk.f32.gmra.mxu2 %vm513_vm1, %v487_v15 }
 0x16e   : > { %848 = vmatmul.msk.f32.gmra.mxu3 %vm513_vm1, %v488_v16 }
 0x16f   : > { %844 = vmatmul.msk.f32.gmra.mxu2 %vm513_vm1, %v488_v16 }
 0x1d9   : > { %v572_v19 = vpop.f32.mrf.mxu3 }
 0x1da   : > { %v543_v18 = vpop.f32.mrf.mxu2  ;;  %v573_v39 = vadd.f32 %v572_v19, %v496_v35 }
 0x1db   : > { %v544_v37 = vadd.f32 %v543_v18, %v496_v35 }
 0x1dc   : > { %v585_v46 = vmax.f32 %v573_v39, 0.0 }
 0x1dd   : > { %v584_v45 = vmax.f32 %v544_v37, 0.0 }
 0x1e1   : > { %v575_v22 = vpop.f32.mrf.mxu3 }
 0x1e2   : > { %v546_v21 = vpop.f32.mrf.mxu2  ;;  %v576_v36 = vadd.f32 %v575_v22, %v501_v25 }
 0x1e3   : > { %v547_v32 = vadd.f32 %v546_v21, %v501_v25 }
 0x1e4   : > { %v587_v44 = vmax.f32 %v576_v36, 0.0 }
 0x1e5   : > { %v586_v41 = vmax.f32 %v547_v32, 0.0 }
 0x1e9   : > { %v578_v24 = vpop.f32.mrf.mxu3 }
 0x1ea   : > { %v549_v23 = vpop.f32.mrf.mxu2  ;;  %v579_v31 = vadd.f32 %v578_v24, %v506_v20 }
 0x1eb   : > { %v550_v28 = vadd.f32 %v549_v23, %v506_v20 }
 0x1ec   : > { %v589_v40 = vmax.f32 %v579_v31, 0.0 }
 0x1ed   : > { %v588_v38 = vmax.f32 %v550_v28, 0.0 }
 0x1f1   : > { %v581_v27 = vpop.f32.mrf.mxu3 }
 0x1f2   : > { %v552_v26 = vpop.f32.mrf.mxu2  ;;  %v582_v30 = vadd.f32 %v581_v27, %v511_v17 }
 0x1f3   : > { %v553_v29 = vadd.f32 %v552_v26, %v511_v17 }
 0x1f4   : > { %v591_v34 = vmax.f32 %v582_v30, 0.0 }
 0x1f5   : > { %v590_v33 = vmax.f32 %v553_v29, 0.0 }
 0x1f6   : > { %647 = vmatpush.msrb.mxu1 %v591_v34  ;;  %859 = vmatpush.msrb.mxu3 %v591_v34 }
 0x1f7   : > { %624 = vmatpush.msrb.mxu0 %v590_v33  ;;  %855 = vmatpush.msrb.mxu2 %v590_v33 }
 0x1f8   : > { %648 = vmatpush.msrb.mxu1 %v589_v40  ;;  %860 = vmatpush.msrb.mxu3 %v589_v40 }
 0x1f9   : > { %625 = vmatpush.msrb.mxu0 %v588_v38  ;;  %856 = vmatpush.msrb.mxu2 %v588_v38 }
 0x1fa   : > { %649 = vmatpush.msrb.mxu1 %v587_v44  ;;  %861 = vmatpush.msrb.mxu3 %v587_v44 }
 0x1fb   : > { %626 = vmatpush.msrb.mxu0 %v586_v41  ;;  %857 = vmatpush.msrb.mxu2 %v586_v41 }
 0x1fc   : > { %650 = vmatpush.msrb.mxu1 %v585_v46  ;;  %862 = vmatpush.msrb.mxu3 %v585_v46 }
 0x1fd   : > { %627 = vmatpush.msrb.mxu0 %v584_v45  ;;  %858 = vmatpush.msrb.mxu2 %v584_v45 }
 0x1fe   : > { %849 = vmatmul.msk.f32.vlgmr.msrb.gmra.mxu0 %vm513_vm1, %v592_v47  ;;  %850 = vmatmul.msk.f32.vlgmr.msrb.gmra.mxu2 %vm513_vm1, %v593_v48 }
 0x1ff   : > { %851 = vmatmul.msk.f32.vlgmr.msrb.gmra.mxu1 %vm513_vm1, %v592_v47  ;;  %852 = vmatmul.msk.f32.vlgmr.msrb.gmra.mxu3 %vm513_vm1, %v593_v48 }
 0x27b   : > { %v629_v55 = vpop.f32.mrf.mxu0 }
 0x27c   : > { %v630_v58 = vadd.f32 %v629_v55, %v599_v57  ;;  %v652_v4 = vpop.f32.mrf.mxu1 }
 0x27d   : > { %v653_v5 = vadd.f32 %v652_v4, %v599_v57 }
 0x27e   : > { %v662_v59 = vsub.f32 %v1007_v43, %v630_v58 }
 0x27f   : > { %v663_v7 = vsub.f32 %v1005_v42, %v653_v5 }
 0x281   : > { %v632_v50 = vpop.f32.mrf.mxu2 }
 0x282   : > { %v633_v51 = vadd.f32 %v632_v50, %v604_v49  ;;  %v655_v62 = vpop.f32.mrf.mxu3 }
 0x283   : > { %v656_v63 = vadd.f32 %v655_v62, %v604_v49 }
 0x284   : > { %v658_v52 = vmax.f32 %v633_v51, -5.0 }
 0x285   : > { %v659_v0 = vmax.f32 %v656_v63, -5.0 }
 0x286   : > { %v660_v53 = vmin.f32 %v658_v52, 3.0 }
 0x287   : > { %v661_v1 = vmin.f32 %v659_v0, 3.0 }
 0x288   : > { %v664_v54 = vsub.f32 0.0, %v660_v53 }
 0x289   : > { %v665_v2 = vsub.f32 0.0, %v661_v1 }
 0x28a   : > { %v666_v56 = vmul.f32 1.442695, %v664_v54 }
 0x28b   : > { %v668_v3 = vmul.f32 1.442695, %v665_v2 }
 0x28c   : > { %875 = vpow2.f32 %v666_v56 }
 0x28d   : > { %877 = vpow2.f32 %v668_v3 }
 0x292   : > { %v876_v60 = vpop.eup %875 }
 0x293   : > { %v670_v61 = vmul.f32 %v876_v60, %v662_v59  ;;  %v878_v6 = vpop.eup %877 }
 0x294   : > { %v671_v8 = vmul.f32 %v878_v6, %v663_v7 }
 0x295   : > { %672 = vxpose.xlu2.b32.start.end [1/1] (short) %v670_v61, 128 }
 0x315   : > { %704 = vxpose.xlu2.b32.start.end [1/1] (short) %v671_v8, 128 }
 0x32e   : > { %v688_v43 = vpop.trf.xlu2 }
 0x32f   : > { %736 = vst.msk [vmem:[%s1071_s10] sm:$0xff] %vm406_vm0, %v688_v43 }
 0x336   : > { %v689_v42 = vpop.trf.xlu2 }
 0x337   : > { %737 = vst.msk [vmem:[%s1071_s10 + $0x8] sm:$0xff] %vm406_vm0, %v689_v42 }
 0x33e   : > { %v690_v9 = vpop.trf.xlu2 }
 0x33f   : > { %738 = vst.msk [vmem:[%s1071_s10 + $0x10] sm:$0xff] %vm406_vm0, %v690_v9 }
 0x346   : > { %v691_v10 = vpop.trf.xlu2 }
 0x347   : > { %739 = vst.msk [vmem:[%s1071_s10 + $0x18] sm:$0xff] %vm406_vm0, %v691_v10 }
 0x34e   : > { %v692_v11 = vpop.trf.xlu2 }
 0x34f   : > { %740 = vst.msk [vmem:[%s1071_s10 + $0x20] sm:$0xff] %vm406_vm0, %v692_v11 }
 0x356   : > { %v693_v12 = vpop.trf.xlu2 }
 0x357   : > { %741 = vst.msk [vmem:[%s1071_s10 + $0x28] sm:$0xff] %vm406_vm0, %v693_v12 }
 0x35e   : > { %v694_v13 = vpop.trf.xlu2 }
 0x35f   : > { %742 = vst.msk [vmem:[%s1071_s10 + $0x30] sm:$0xff] %vm406_vm0, %v694_v13 }
 0x366   : > { %v695_v14 = vpop.trf.xlu2 }
 0x367   : > { %743 = vst.msk [vmem:[%s1071_s10 + $0x38] sm:$0xff] %vm406_vm0, %v695_v14 }
 0x36e   : > { %v696_v15 = vpop.trf.xlu2 }
 0x36f   : > { %744 = vst.msk [vmem:[%s1071_s10 + $0x40] sm:$0xff] %vm406_vm0, %v696_v15 }
 0x376   : > { %v697_v16 = vpop.trf.xlu2 }
 0x377   : > { %745 = vst.msk [vmem:[%s1071_s10 + $0x48] sm:$0xff] %vm406_vm0, %v697_v16 }
 0x37e   : > { %v698_v17 = vpop.trf.xlu2 }
 0x37f   : > { %746 = vst.msk [vmem:[%s1071_s10 + $0x50] sm:$0xff] %vm406_vm0, %v698_v17 }
 0x386   : > { %v699_v18 = vpop.trf.xlu2 }
 0x387   : > { %747 = vst.msk [vmem:[%s1071_s10 + $0x58] sm:$0xff] %vm406_vm0, %v699_v18 }
 0x38e   : > { %v700_v19 = vpop.trf.xlu2 }
 0x38f   : > { %748 = vst.msk [vmem:[%s1071_s10 + $0x60] sm:$0xff] %vm406_vm0, %v700_v19 }
 0x396   : > { %v701_v20 = vpop.trf.xlu2 }
 0x397   : > { %749 = vst.msk [vmem:[%s1071_s10 + $0x68] sm:$0xff] %vm406_vm0, %v701_v20 }
 0x39e   : > { %v702_v21 = vpop.trf.xlu2 }
 0x39f   : > { %750 = vst.msk [vmem:[%s1071_s10 + $0x70] sm:$0xff] %vm406_vm0, %v702_v21 }
 0x3a6   : > { %v703_v22 = vpop.trf.xlu2 }
 0x3a7   : > { %751 = vst.msk [vmem:[%s1071_s10 + $0x78] sm:$0xff] %vm406_vm0, %v703_v22 }
 0x3ae   : > { %v720_v23 = vpop.trf.xlu2 }
 0x3af   : > { %752 = vst.msk [vmem:[%s1071_s10 + $0x80] sm:$0xff] %vm406_vm0, %v720_v23 }
 0x3b6   : > { %v721_v24 = vpop.trf.xlu2 }
 0x3b7   : > { %753 = vst.msk [vmem:[%s1071_s10 + $0x88] sm:$0xff] %vm406_vm0, %v721_v24 }
 0x3be   : > { %v722_v25 = vpop.trf.xlu2 }
 0x3bf   : > { %754 = vst.msk [vmem:[%s1071_s10 + $0x90] sm:$0xff] %vm406_vm0, %v722_v25 }
 0x3c6   : > { %v723_v26 = vpop.trf.xlu2 }
 0x3c7   : > { %755 = vst.msk [vmem:[%s1071_s10 + $0x98] sm:$0xff] %vm406_vm0, %v723_v26 }
 0x3ce   : > { %v724_v27 = vpop.trf.xlu2 }
 0x3cf   : > { %756 = vst.msk [vmem:[%s1071_s10 + $0xa0] sm:$0xff] %vm406_vm0, %v724_v27 }
 0x3d6   : > { %v725_v28 = vpop.trf.xlu2 }
 0x3d7   : > { %757 = vst.msk [vmem:[%s1071_s10 + $0xa8] sm:$0xff] %vm406_vm0, %v725_v28 }
 0x3de   : > { %v726_v29 = vpop.trf.xlu2 }
 0x3df   : > { %758 = vst.msk [vmem:[%s1071_s10 + $0xb0] sm:$0xff] %vm406_vm0, %v726_v29 }
 0x3e6   : > { %v727_v30 = vpop.trf.xlu2 }
 0x3e7   : > { %759 = vst.msk [vmem:[%s1071_s10 + $0xb8] sm:$0xff] %vm406_vm0, %v727_v30 }
 0x3ee   : > { %v728_v31 = vpop.trf.xlu2 }
 0x3ef   : > { %760 = vst.msk [vmem:[%s1071_s10 + $0xc0] sm:$0xff] %vm406_vm0, %v728_v31 }
 0x3f6   : > { %v729_v32 = vpop.trf.xlu2 }
 0x3f7   : > { %761 = vst.msk [vmem:[%s1071_s10 + $0xc8] sm:$0xff] %vm406_vm0, %v729_v32 }
 0x3fe   : > { %v730_v33 = vpop.trf.xlu2 }
 0x3ff   : > { %762 = vst.msk [vmem:[%s1071_s10 + $0xd0] sm:$0xff] %vm406_vm0, %v730_v33 }
 0x406   : > { %v731_v34 = vpop.trf.xlu2 }
 0x407   : > { %763 = vst.msk [vmem:[%s1071_s10 + $0xd8] sm:$0xff] %vm406_vm0, %v731_v34 }
 0x40e   : > { %v732_v35 = vpop.trf.xlu2 }
 0x40f   : > { %764 = vst.msk [vmem:[%s1071_s10 + $0xe0] sm:$0xff] %vm406_vm0, %v732_v35 }
 0x416   : > { %v733_v36 = vpop.trf.xlu2 }
 0x417   : > { %765 = vst.msk [vmem:[%s1071_s10 + $0xe8] sm:$0xff] %vm406_vm0, %v733_v36 }
 0x41e   : > { %v734_v37 = vpop.trf.xlu2 }
 0x41f   : > { %766 = vst.msk [vmem:[%s1071_s10 + $0xf0] sm:$0xff] %vm406_vm0, %v734_v37 }
 0x426   : > { %v735_v38 = vpop.trf.xlu2 }
 0x427   : > { %767 = vst.msk [vmem:[%s1071_s10 + $0xf8] sm:$0xff] %vm406_vm0, %v735_v38 }
 0x428 PF: > { %s17_s24 = sadd.s32 1, %s885_s24  }
 0x429   : > { %p14_p4 = scmp.ge.s32.totalorder %s17_s24, 4  }
 0x42b   :  { %16 = sbr.rel (!%p14_p4) target bundleno = 1 (0x1), region = 78 }

</bundles_post_ra>
